<compile_context>
chip_gen: v6e
topology: v6e:2x2x1
jax: 0.10.0
libtpu: 0.0.40
codegen_flags: <defaults>
</compile_context>

<pallas_src>
import functools

import jax
import jax.numpy as jnp
from jax import lax
from jax.experimental import pallas as pl
from jax.experimental.pallas import tpu as pltpu


def _round_up(x, m):
    return ((x + m - 1) // m) * m


def _vmem_budget_bytes():
    """Conservative per-kernel VMEM budget, gated on the actual chip."""
    try:
        cap = int(pltpu.get_tpu_info().vmem_capacity_bytes)
    except Exception:
        cap = 64 * 1024 * 1024  # assume the tightest chip (v7x: 64 MiB / TC)
    # Half of physical VMEM, capped at 56 MiB (v5e/v6e: 56 MiB, v7x: 32 MiB).
    return min(cap // 2, 56 * 1024 * 1024)


# ---------------------------------------------------------------------------
# Kernels
# ---------------------------------------------------------------------------
def _proj_resident_kernel(x_ref, w_ref, b_ref, o_ref):
    # x_ref: (TM, K)   w_ref: (K, Np)   b_ref: (1, Np)   o_ref: (TM, Np)
    # W / bias block indices are constant across the 1-D M grid, so Pallas
    # keeps them resident; each step streams one x tile and writes one
    # lane-dense output tile.  No reduction axis -> no scratch accumulator.
    acc = jnp.dot(x_ref[...], w_ref[...], preferred_element_type=jnp.float32)
    o_ref[...] = (acc + b_ref[...].astype(jnp.float32)).astype(o_ref.dtype)


def _proj_splitk_kernel(x_ref, w_ref, b_ref, o_ref, acc_ref, *,
                        k_total, tile_k, mask_last_k):
    # Fallback when the whole weight does not fit in VMEM.
    # x_ref: (TM, TK)  w_ref: (TK, TN)  b_ref: (1, TN)  o_/acc_ref: (TM, TN)
    k = pl.program_id(2)

    @pl.when(k == 0)
    def _():
        acc_ref[...] = jnp.zeros_like(acc_ref)

    x = x_ref[...]
    if mask_last_k:
        # K is ragged w.r.t. tile_k: the weight's K dim is zero-padded, but
        # the x tile past column k_total holds garbage (possibly NaN) ->
        # zero it explicitly before it reaches the MXU.
        col = k * tile_k + lax.broadcasted_iota(jnp.int32, x.shape, 1)
        x = jnp.where(col < k_total, x, jnp.zeros_like(x))

    acc_ref[...] += jnp.dot(x, w_ref[...], preferred_element_type=jnp.float32)

    @pl.when(k == pl.num_programs(2) - 1)
    def _():
        o_ref[...] = (acc_ref[...] + b_ref[...].astype(jnp.float32)
                      ).astype(o_ref.dtype)


# ---------------------------------------------------------------------------
# Wrapper
# ---------------------------------------------------------------------------
def projection_forward(x, weight, bias, *, tile_m=512, tile_n=256, tile_k=512,
                       cast_to_bf16=False, force_split_k=False):
    """y = x @ weight.T + bias (nn.Linear semantics).

    x:      (..., patch_dim)
    weight: (d_dim, patch_dim)   (PyTorch layout)
    bias:   (d_dim,)
    """
    patch_dim = x.shape[-1]
    d_dim = weight.shape[0]
    lead_shape = x.shape[:-1]
    out_dtype = x.dtype

    x2d = x.reshape(-1, patch_dim)                  # (M, K) — no copy/pad of x
    M, K = x2d.shape

    # Pad only the *small* tensors (weight / bias) so the output last dim is a
    # multiple of 128 (lane-dense, unmasked stores).  Pre-transpose W once to
    # (K, Np) so the kernel contracts dim1-of-x with dim0-of-W (no XLU work).
    Np = _round_up(d_dim, 128)
    pad_n = Np - d_dim
    w_kn = weight.T                                  # (K, d_dim)
    b_1n = bias
    if pad_n:
        w_kn = jnp.pad(w_kn, ((0, 0), (0, pad_n)))
        b_1n = jnp.pad(b_1n, ((0, pad_n),))
    b_1n = b_1n.reshape(1, Np).astype(jnp.float32)

    if cast_to_bf16:
        # HBM-side cast: halves HBM traffic and VMEM tile footprint; f32
        # accumulation kept via preferred_element_type in the kernel.
        x2d = x2d.astype(jnp.bfloat16)
        w_kn = w_kn.astype(jnp.bfloat16)

    x_isz = x2d.dtype.itemsize
    w_isz = w_kn.dtype.itemsize
    o_isz = jnp.zeros((), out_dtype).dtype.itemsize

    budget = _vmem_budget_bytes()

    # ------------------------ resident-weight path --------------------------
    def _resident_bytes(tm_):
        return (2 * tm_ * K * x_isz          # x tile (double-buffered)
                + 2 * K * Np * w_isz         # resident weight
                + 2 * Np * 4                 # bias
                + 2 * tm_ * Np * o_isz)      # output tile

    tm_req = min(_round_up(tile_m, 8), _round_up(M, 8))
    tm = tm_req
    use_resident = not force_split_k
    if use_resident:
        fits, cand = False, tm_req
        while True:
            if _resident_bytes(cand) <= budget:
                fits, tm = True, cand
                break
            if cand <= 8:
                break
            cand = _round_up(max(cand // 2, 8), 8)
        use_resident = fits

    if use_resident:
        grid = (pl.cdiv(M, tm),)
        out = pl.pallas_call(
            _proj_resident_kernel,
            out_shape=jax.ShapeDtypeStruct((M, Np), out_dtype),
            grid_spec=pltpu.PrefetchScalarGridSpec(
                num_scalar_prefetch=0,
                grid=grid,
                in_specs=[
                    pl.BlockSpec((tm, K), lambda i: (i, 0)),    # x tile
                    pl.BlockSpec((K, Np), lambda i: (0, 0)),    # resident W
                    pl.BlockSpec((1, Np), lambda i: (0, 0)),    # resident bias
                ],
                out_specs=pl.BlockSpec((tm, Np), lambda i: (i, 0)),
            ),
            compiler_params=pltpu.CompilerParams(
                dimension_semantics=("parallel",),   # M tiles shard across TCs
                vmem_limit_bytes=budget,
            ),
        )(x2d, w_kn, b_1n)
    else:
        # -------------------------- split-K fallback ------------------------
        tn = min(_round_up(tile_n, 128), Np)
        while Np % tn != 0:
            tn -= 128

        tk = min(_round_up(tile_k, 128), _round_up(K, 128))
        if tk >= K:
            tk, Kp, mask_last_k = K, K, False         # whole K in one tile
        else:
            Kp = _round_up(K, tk)
            mask_last_k = (Kp != K)
        if Kp != K:
            # Pad K only on the small weight (zeros); x stays unpadded and its
            # ragged last K tile is masked in-kernel.
            w_kn = jnp.pad(w_kn, ((0, Kp - K), (0, 0)))

        def _splitk_bytes(tm_):
            return (2 * tm_ * tk * x_isz + 2 * tk * tn * w_isz
                    + 2 * tn * 4 + 2 * tm_ * tn * o_isz + tm_ * tn * 4)

        tm = min(_round_up(tile_m, 8), _round_up(M, 8))
        while tm > 8 and _splitk_bytes(tm) > budget:
            tm = _round_up(max(tm // 2, 8), 8)

        kernel = functools.partial(
            _proj_splitk_kernel, k_total=K, tile_k=tk, mask_last_k=mask_last_k)
        grid = (pl.cdiv(M, tm), Np // tn, Kp // tk)
        out = pl.pallas_call(
            kernel,
            out_shape=jax.ShapeDtypeStruct((M, Np), out_dtype),
            grid_spec=pltpu.PrefetchScalarGridSpec(
                num_scalar_prefetch=0,
                grid=grid,
                in_specs=[
                    pl.BlockSpec((tm, tk), lambda i, j, k: (i, k)),   # x
                    pl.BlockSpec((tk, tn), lambda i, j, k: (k, j)),   # W (K,N)
                    pl.BlockSpec((1, tn),  lambda i, j, k: (0, j)),   # bias
                ],
                out_specs=pl.BlockSpec((tm, tn), lambda i, j, k: (i, j)),
                scratch_shapes=[pltpu.VMEM((tm, tn), jnp.float32)],
            ),
            compiler_params=pltpu.CompilerParams(
                dimension_semantics=("parallel", "parallel", "arbitrary"),
                vmem_limit_bytes=budget,
            ),
        )(x2d, w_kn, b_1n)

    if pad_n:
        out = out[:, :d_dim]
    return out.reshape(*lead_shape, d_dim)


if __name__ == "__main__":
    # Small, deterministic configuration consistent with the module:
    # patch tokens of dim patch_dim projected to model dim d_dim.
    batch, seq, patch_dim, d_dim = 2, 8, 32, 64

    key = jax.random.PRNGKey(0)
    kx, kw, kb = jax.random.split(key, 3)

    x = jax.random.normal(kx, (batch, seq, patch_dim), dtype=jnp.float32)

    # Deterministic init mimicking nn.Linear defaults: U(-1/sqrt(K), 1/sqrt(K))
    bound = 1.0 / (patch_dim ** 0.5)
    weight = jax.random.uniform(kw, (d_dim, patch_dim), jnp.float32,
                                minval=-bound, maxval=bound)
    bias = jax.random.uniform(kb, (d_dim,), jnp.float32,
                              minval=-bound, maxval=bound)

    y_ref = x @ weight.T + bias

    # Primary resident-weight path (1-D grid over M), f32.
    y = projection_forward(x, weight, bias)
    jax.block_until_ready(y)
    assert y.shape == (batch, seq, d_dim)
    assert jnp.allclose(y, y_ref, atol=1e-5, rtol=1e-5)

    # bf16-MXU path (wrapper-side cast, f32 accumulation).
    y_bf16 = projection_forward(x, weight, bias, cast_to_bf16=True)
    jax.block_until_ready(y_bf16)
    assert jnp.allclose(y_bf16, y_ref, atol=5e-2, rtol=5e-2)

    # Exercise the split-K fallback (used when W cannot be VMEM-resident).
    y_split = projection_forward(x, weight, bias, force_split_k=True)
    jax.block_until_ready(y_split)
    assert jnp.allclose(y_split, y_ref, atol=1e-5, rtol=1e-5)

    print("KERNEL_OK")
</pallas_src>

<mosaic_0001>
module attributes {stable_mosaic.version = 11 : i64} {
  func.func @_proj_resident_kernel(%arg0: i32, %arg1: memref<16x32xf32, #tpu.memory_space<vmem>>, %arg2: memref<32x128xf32, #tpu.memory_space<vmem>>, %arg3: memref<1x128xf32, #tpu.memory_space<vmem>>, %arg4: memref<16x128xf32, #tpu.memory_space<vmem>>) attributes {dimension_semantics = [#tpu.dimension_semantics<parallel>], iteration_bounds = array<i64: 1>, scalar_prefetch = 0 : i64, scratch_operands = 0 : i64, tpu.core_type = #tpu.core_type<tc>, window_params = [{transform_indices = @transform_0, window_bounds = array<i64: 16, 32>}, {pipeline_mode = #tpu.pipeline_mode<synchronous>, transform_indices = @transform_1, window_bounds = array<i64: 32, 128>}, {pipeline_mode = #tpu.pipeline_mode<synchronous>, transform_indices = @transform_2, window_bounds = array<i64: 1, 128>}, {transform_indices = @transform_3, window_bounds = array<i64: 16, 128>}]} {
    %c0 = arith.constant 0 : index
    %c0_0 = arith.constant 0 : index
    %0 = vector.load %arg1[%c0, %c0_0] : memref<16x32xf32, #tpu.memory_space<vmem>>, vector<16x32xf32>
    %c0_1 = arith.constant 0 : index
    %c0_2 = arith.constant 0 : index
    %1 = vector.load %arg2[%c0_1, %c0_2] : memref<32x128xf32, #tpu.memory_space<vmem>>, vector<32x128xf32>
    %cst = arith.constant dense<0.000000e+00> : vector<16x128xf32>
    %2 = tpu.matmul %0, %1, %cst {dimension_numbers = #tpu.dot_dimension_numbers<[1], [0], [0], [1], [0, 0, 1, 1], [], []>} : vector<16x32xf32>, vector<32x128xf32>, vector<16x128xf32> -> vector<16x128xf32>
    %c0_3 = arith.constant 0 : index
    %c0_4 = arith.constant 0 : index
    %3 = vector.load %arg3[%c0_3, %c0_4] : memref<1x128xf32, #tpu.memory_space<vmem>>, vector<1x128xf32>
    %4 = vector.broadcast %3 : vector<1x128xf32> to vector<16x128xf32>
    %5 = arith.addf %2, %4 : vector<16x128xf32>
    %c0_5 = arith.constant 0 : index
    %c0_6 = arith.constant 0 : index
    %6 = vector.load %arg4[%c0_5, %c0_6] : memref<16x128xf32, #tpu.memory_space<vmem>>, vector<16x128xf32>
    tpu.vector_store %arg4[%c0_5, %c0_6], %5 {strides = array<i32>} : memref<16x128xf32, #tpu.memory_space<vmem>>, vector<16x128xf32>,
    return
  }
  func.func @transform_0(%arg0: i32) -> (i32, i32) {
    %c0_i32 = arith.constant 0 : i32
    %c0_i32_0 = arith.constant 0 : i32
    return %arg0, %c0_i32 : i32, i32
  }
  func.func @transform_1(%arg0: i32) -> (i32, i32) {
    %c0_i32 = arith.constant 0 : i32
    %c0_i32_0 = arith.constant 0 : i32
    %c0_i32_1 = arith.constant 0 : i32
    return %c0_i32, %c0_i32_0 : i32, i32
  }
  func.func @transform_2(%arg0: i32) -> (i32, i32) {
    %c0_i32 = arith.constant 0 : i32
    %c0_i32_0 = arith.constant 0 : i32
    %c0_i32_1 = arith.constant 0 : i32
    return %c0_i32, %c0_i32_0 : i32, i32
  }
  func.func @transform_3(%arg0: i32) -> (i32, i32) {
    %c0_i32 = arith.constant 0 : i32
    %c0_i32_0 = arith.constant 0 : i32
    return %arg0, %c0_i32 : i32, i32
  }
}

</mosaic_0001>

<bundles_post_ra>
// kernel: tpu_custom_call.1
= control target key start
LH: loop header
LB: loop body
LE: loop exit
PB: predicated region body
PF: predicated region fallthrough
CT: control target
= control target key end

     0   :  { %8 = vsyncpa [#allocation3], 0  ;;  %s297_s0 = inlined_call_operand.hbm [shape: f32[16,32], index: 0, kind: input, shape index: {}]   ;;  %s298_s1 = inlined_call_operand.hbm [shape: f32[32,128], index: 1, kind: input, shape index: {}]   ;;  %s299_s2 = inlined_call_operand.vmem [shape: f32[1,128], index: 2, kind: input, shape index: {}]   ;;  %s300_s3 = inlined_call_operand.hbm [shape: f32[16,128], index: 3, kind: output, shape index: {}]  }
   0x1   :  { %9 = vsyncpa [#allocation6], 0 }
   0x2   :  { %10 = vsyncpa [#allocation4], 0  ;;  %s249_s12 = smov [#allocation2]  }
   0x3   :  { %s16_s13 = sshll.u32 %s249_s12, 4  ;;  %s17_s13 = int_to_ptr.vmem [resolvable:$true] %s16_s13 }
   0x4   :  { %s191_s14 = scalar_lea.vmem %s17_s13, 256  ;;  %p196_p1 = scmp.lt.s32.totalorder %s17_s13, %s17_s13 }
   0x5   :  { %p192_p0 = scmp.ne.s32.totalorder %s17_s13, %s191_s14  ;;  %p197_p2 = scmp.lt.s32.totalorder %s191_s14, %s191_s14 }
   0x7   :  { %p198_p3 = por %p197_p2, %p196_p1 }
   0x9   :  { %p199_p4 = pnand %p198_p3, %p192_p0 }
   0xb   :  { %202 = shalt.err (!%p199_p4)
}
   0xc   :  { %s250_s15 = smov 128   ;;  %s251_s16 = smov 8  }
   0xd   :  { %22 = dma.hbm_to_vmem [thread:$0]  %s297_s0, 256, %s17_s13, [#allocation3], %s250_s15, %s250_s15, %s251_s16  }
   0xe   :  { %s252_s19 = smov [#allocation5]  }
   0xf   :  { %s28_s20 = sshll.u32 %s252_s19, 4  ;;  %s29_s20 = int_to_ptr.vmem [resolvable:$true] %s28_s20 }
  0x10   :  { %s211_s21 = scalar_lea.vmem %s29_s20, 512  ;;  %p216_p6 = scmp.lt.s32.totalorder %s29_s20, %s29_s20 }
  0x11   :  { %p212_p5 = scmp.ne.s32.totalorder %s29_s20, %s211_s21  ;;  %p217_p7 = scmp.lt.s32.totalorder %s211_s21, %s211_s21 }
  0x13   :  { %p218_p8 = por %p217_p7, %p216_p6 }
  0x15   :  { %p219_p9 = pnand %p218_p8, %p212_p5 }
  0x17   :  { %222 = shalt.err (!%p219_p9)
}
  0x18   :  { %34 = dma.hbm_to_vmem [thread:$0]  %s298_s1, 512, %s29_s20, [#allocation6], %s250_s15, %s250_s15, %s251_s16  }
  0x19   :  { %243 = dma.done.wait [#allocation3], 256  }
  0x1a   :  { %244 = vsyncadd [#allocation3], 4294967040 }
  0x1b   :  { %245 = dma.done.wait [#allocation6], 512  }
  0x1c   :  { %246 = vsyncadd [#allocation6], 4294966784  ;;  %vm56_vm0 = vcmask 261120   ;;  %v48_v0 = vld [vmem:[#allocation5 + $0x18] sm:$0xff]  ;;  %v47_v1 = vld [vmem:[#allocation5 + $0x10] sm:$0xff]  ;;  %s253_s24 = smov [#allocation7]  }
  0x1d   :  { %167 = vmatprep.subr.mxu0 %v48_v0  ;;  %v43_v2 = vld [vmem:[#allocation2] sm:$0xff]  ;;  %v46_v3 = vld [vmem:[#allocation5 + $0x8] sm:$0xff]  ;;  %v45_v4 = vld [vmem:[#allocation5] sm:$0xff]  ;;  %s145_s25 = sshll.u32 %s253_s24, 4  ;;  %s146_s25 = int_to_ptr.vmem [resolvable:$true] %s145_s25 }
  0x1e   :  { %168 = vmatpush3.msra.mxu0 %v48_v0  ;;  %175 = vmatprep.mubr.msk.f32.mxu0 %vm56_vm0, %v43_v2  ;;  %v44_v5 = vld [vmem:[#allocation2 + $0x8] sm:$0xff]  ;;  %v158_v6 = vld [vmem:[%s299_s2] ss:$0 sm:$0xff]  ;;  %s223_s26 = scalar_lea.vmem %s146_s25, 256  ;;  %p228_p11 = scmp.lt.s32.totalorder %s146_s25, %s146_s25 }
  0x1f   :  { %169 = vmatprep.subr.mxu0 %v47_v1  ;;  %p224_p10 = scmp.ne.s32.totalorder %s146_s25, %s223_s26  ;;  %p229_p12 = scmp.lt.s32.totalorder %s223_s26, %s223_s26 }
  0x20   :  { %170 = vmatpush3.msra.mxu0 %v47_v1 }
  0x21   :  { %171 = vmatprep.subr.mxu0 %v46_v3  ;;  %p230_p13 = por %p229_p12, %p228_p11 }
  0x22   :  { %172 = vmatpush3.msra.mxu0 %v46_v3 }
  0x23   :  { %173 = vmatprep.subr.mxu0 %v45_v4  ;;  %p231_p0 = pnand %p230_p13, %p224_p10 }
  0x24   :  { %174 = vmatpush3.msra.mxu0 %v45_v4 }
  0x25   :  { %176 = vmatmul.mubr.msk.f32.vlgmr.msra.gmra.mxu0 %vm56_vm0, %v44_v5 }
  0xe5   :  { %v177_v7 = vpop.f32.mrf.mxu0 }
  0xe6   :  { %v135_v8 = vadd.f32 %v177_v7, %v158_v6 }
  0xe7   :  { %v129_v9 = vpop.f32.mrf.mxu0 }
  0xe8   :  { %139 = vst [vmem:[#allocation7 + $0x8] sm:$0xff] %v135_v8  ;;  %v130_v10 = vadd.f32 %v158_v6, %v129_v9 }
  0xea   :  { %138 = vst [vmem:[#allocation7] sm:$0xff] %v130_v10 }
  0xeb   :  { %234 = shalt.err (!%p231_p0)
}
  0xec   :  { %151 = dma.vmem_to_hbm [thread:$0]  %s146_s25, 256, %s300_s3, [#allocation4], %s250_s15, %s250_s15, %s251_s16  }
  0xed   :  { %247 = dma.done.wait [#allocation4], 256  }
  0xee   :  { %248 = vsyncadd [#allocation4], 4294967040 }
  0xef   :  { %155 = vsyncpa [#allocation3], 1 }
  0xf0   :  { %156 = vsyncpa [#allocation6], 1 }
  0xf1   :  { %157 = vsyncpa [#allocation4], 1 }

</bundles_post_ra>
